<compile_context>
chip_gen: v5e
topology: v5e:2x2
jax: 0.10.0
libtpu: 0.0.40
codegen_flags: <defaults>
</compile_context>

<pallas_src>
import jax
import jax.numpy as jnp
from jax.experimental import pallas as pl
from jax.experimental.pallas import tpu as pltpu

LANE = 128


def _round_up(n, m):
    return ((n + m - 1) // m) * m


# --------------------------------------------------------------------------
# Kernel: one batch tile of state -> net_state -> net_a_avg -> tanh
# --------------------------------------------------------------------------
def actor_sac_kernel(x_ref, w1_ref, b1_ref, w2_ref, b2_ref,
                     w3_ref, b3_ref, w4_ref, b4_ref, o_ref):
    # net_state: Linear -> ReLU -> Linear -> ReLU
    x = x_ref[...].astype(jnp.bfloat16)                       # bf16 into MXU
    h = jnp.dot(x, w1_ref[...], preferred_element_type=jnp.float32) + b1_ref[...]
    h = jnp.maximum(h, 0.0)
    h = jnp.dot(h.astype(jnp.bfloat16), w2_ref[...],
                preferred_element_type=jnp.float32) + b2_ref[...]
    h = jnp.maximum(h, 0.0)
    # net_a_avg: Linear -> Hardswish -> Linear, then tanh
    z = jnp.dot(h.astype(jnp.bfloat16), w3_ref[...],
                preferred_element_type=jnp.float32) + b3_ref[...]
    z = z * jnp.clip(z + 3.0, 0.0, 6.0) * (1.0 / 6.0)          # Hardswish (f32, VPU)
    a = jnp.dot(z.astype(jnp.bfloat16), w4_ref[...],
                preferred_element_type=jnp.float32) + b4_ref[...]
    o_ref[...] = jnp.tanh(a)                                   # EUP


# --------------------------------------------------------------------------
# Wrapper
# --------------------------------------------------------------------------
def actor_sac_forward(state, padded_params, action_dim, *, block_b=1024):
    """state: [B, state_dim] f32; padded_params: lane-padded bf16 weights / f32 biases."""
    state = state.astype(jnp.float32)
    B, S = state.shape

    TB = min(block_b, _round_up(B, 8))     # batch tile (multiple of 8 sublanes)
    Bp = _round_up(B, TB)
    if Bp != B:
        state = jnp.pad(state, ((0, Bp - B), (0, 0)))

    (w1, b1, w2, b2, w3, b3, w4, b4) = padded_params
    AP = w4.shape[1]                       # lane-padded action width

    def resident(arr):
        nd = arr.ndim
        return pl.BlockSpec(arr.shape, lambda i, _nd=nd: (0,) * _nd)

    out = pl.pallas_call(
        actor_sac_kernel,
        out_shape=jax.ShapeDtypeStruct((Bp, AP), jnp.float32),
        grid=(Bp // TB,),
        in_specs=[
            pl.BlockSpec((TB, S), lambda i: (i, 0)),           # state tile
            resident(w1), resident(b1),
            resident(w2), resident(b2),
            resident(w3), resident(b3),
            resident(w4), resident(b4),
        ],
        out_specs=pl.BlockSpec((TB, AP), lambda i: (i, 0)),    # lane-dense output
        compiler_params=pltpu.CompilerParams(
            dimension_semantics=("parallel",),                 # shard batch across TCs
        ),
    )(state, w1, b1, w2, b2, w3, b3, w4, b4)

    return out[:B, :action_dim]


# --------------------------------------------------------------------------
# Parameter construction (PyTorch nn.Linear-style init) + one-time padding
# --------------------------------------------------------------------------
def init_linear(key, fan_in, fan_out):
    kw, kb = jax.random.split(key)
    bound = 1.0 / jnp.sqrt(fan_in)
    w = jax.random.uniform(kw, (fan_in, fan_out), jnp.float32, -bound, bound)
    b = jax.random.uniform(kb, (1, fan_out), jnp.float32, -bound, bound)
    return w, b


def make_params(key, state_dim, action_dim, mid_dim):
    k1, k2, k3, k4 = jax.random.split(key, 4)
    w1, b1 = init_linear(k1, state_dim, mid_dim)   # net_state[0]
    w2, b2 = init_linear(k2, mid_dim, mid_dim)     # net_state[2]
    w3, b3 = init_linear(k3, mid_dim, mid_dim)     # net_a_avg[0]
    w4, b4 = init_linear(k4, mid_dim, action_dim)  # net_a_avg[2]
    return (w1, b1, w2, b2, w3, b3, w4, b4)


def pad_params(params, mid_dim, action_dim):
    """Zero-pad feature dims to multiples of 128 lanes; weights -> bf16, biases -> f32."""
    (w1, b1, w2, b2, w3, b3, w4, b4) = params
    MP = _round_up(mid_dim, LANE)
    AP = _round_up(action_dim, LANE)

    def padw(w, rows, cols):
        w = jnp.pad(w, ((0, rows - w.shape[0]), (0, cols - w.shape[1])))
        return w.astype(jnp.bfloat16)

    def padb(b, cols):
        return jnp.pad(b, ((0, 0), (0, cols - b.shape[1]))).astype(jnp.float32)

    S = w1.shape[0]
    return (padw(w1, S, MP), padb(b1, MP),
            padw(w2, MP, MP), padb(b2, MP),
            padw(w3, MP, MP), padb(b3, MP),
            padw(w4, MP, AP), padb(b4, AP))


# --------------------------------------------------------------------------
# Pure-JAX f32 reference (mirrors the PyTorch forward)
# --------------------------------------------------------------------------
def reference_forward(state, params):
    (w1, b1, w2, b2, w3, b3, w4, b4) = params
    h = jnp.maximum(state @ w1 + b1, 0.0)
    h = jnp.maximum(h @ w2 + b2, 0.0)
    z = h @ w3 + b3
    z = z * jnp.clip(z + 3.0, 0.0, 6.0) / 6.0
    return jnp.tanh(z @ w4 + b4)


if __name__ == "__main__":
    # TODO(synk): only forward() is implemented; get_action / get_action_logprob
    # (torch.normal sampling, log-prob correction) and get_obj_alpha are out of scope.
    state_dim, action_dim, mid_dim, batch = 16, 8, 32, 256

    key = jax.random.PRNGKey(0)
    kp, ks = jax.random.split(key)
    params = make_params(kp, state_dim, action_dim, mid_dim)
    padded_params = pad_params(params, mid_dim, action_dim)
    state = jax.random.normal(ks, (batch, state_dim), jnp.float32)

    out = actor_sac_forward(state, padded_params, action_dim, block_b=64)
    out = jax.block_until_ready(out)

    ref = reference_forward(state, params)
    assert out.shape == (batch, action_dim)
    # bf16 matmuls vs f32 reference: loose-but-safe tolerance on tanh outputs.
    assert jnp.allclose(out, ref, atol=5e-2, rtol=5e-2), "mismatch vs reference"

    print("KERNEL_OK")
</pallas_src>

<mosaic_0001>
module attributes {stable_mosaic.version = 11 : i64} {
  func.func @actor_sac_kernel(%arg0: i32, %arg1: memref<64x16xf32, #tpu.memory_space<vmem>>, %arg2: memref<16x128xbf16, #tpu.memory_space<vmem>>, %arg3: memref<1x128xf32, #tpu.memory_space<vmem>>, %arg4: memref<128x128xbf16, #tpu.memory_space<vmem>>, %arg5: memref<1x128xf32, #tpu.memory_space<vmem>>, %arg6: memref<128x128xbf16, #tpu.memory_space<vmem>>, %arg7: memref<1x128xf32, #tpu.memory_space<vmem>>, %arg8: memref<128x128xbf16, #tpu.memory_space<vmem>>, %arg9: memref<1x128xf32, #tpu.memory_space<vmem>>, %arg10: memref<64x128xf32, #tpu.memory_space<vmem>>) attributes {dimension_semantics = [#tpu.dimension_semantics<parallel>], iteration_bounds = array<i64: 4>, scalar_prefetch = 0 : i64, scratch_operands = 0 : i64, tpu.core_type = #tpu.core_type<tc>, window_params = [{transform_indices = @transform_0, window_bounds = array<i64: 64, 16>}, {pipeline_mode = #tpu.pipeline_mode<synchronous>, transform_indices = @transform_1, window_bounds = array<i64: 16, 128>}, {pipeline_mode = #tpu.pipeline_mode<synchronous>, transform_indices = @transform_2, window_bounds = array<i64: 1, 128>}, {pipeline_mode = #tpu.pipeline_mode<synchronous>, transform_indices = @transform_3, window_bounds = array<i64: 128, 128>}, {pipeline_mode = #tpu.pipeline_mode<synchronous>, transform_indices = @transform_4, window_bounds = array<i64: 1, 128>}, {pipeline_mode = #tpu.pipeline_mode<synchronous>, transform_indices = @transform_5, window_bounds = array<i64: 128, 128>}, {pipeline_mode = #tpu.pipeline_mode<synchronous>, transform_indices = @transform_6, window_bounds = array<i64: 1, 128>}, {pipeline_mode = #tpu.pipeline_mode<synchronous>, transform_indices = @transform_7, window_bounds = array<i64: 128, 128>}, {pipeline_mode = #tpu.pipeline_mode<synchronous>, transform_indices = @transform_8, window_bounds = array<i64: 1, 128>}, {transform_indices = @transform_9, window_bounds = array<i64: 64, 128>}]} {
    %c0 = arith.constant 0 : index
    %c0_0 = arith.constant 0 : index
    %0 = vector.load %arg1[%c0, %c0_0] : memref<64x16xf32, #tpu.memory_space<vmem>>, vector<64x16xf32>
    %1 = arith.truncf %0 : vector<64x16xf32> to vector<64x16xbf16>
    %c0_1 = arith.constant 0 : index
    %c0_2 = arith.constant 0 : index
    %2 = vector.load %arg2[%c0_1, %c0_2] : memref<16x128xbf16, #tpu.memory_space<vmem>>, vector<16x128xbf16>
    %cst = arith.constant dense<0.000000e+00> : vector<64x128xf32>
    %3 = tpu.matmul %1, %2, %cst {dimension_numbers = #tpu.dot_dimension_numbers<[1], [0], [0], [1], [0, 0, 1, 1], [], []>} : vector<64x16xbf16>, vector<16x128xbf16>, vector<64x128xf32> -> vector<64x128xf32>
    %c0_3 = arith.constant 0 : index
    %c0_4 = arith.constant 0 : index
    %4 = vector.load %arg3[%c0_3, %c0_4] : memref<1x128xf32, #tpu.memory_space<vmem>>, vector<1x128xf32>
    %5 = vector.broadcast %4 : vector<1x128xf32> to vector<64x128xf32>
    %6 = arith.addf %3, %5 : vector<64x128xf32>
    %cst_5 = arith.constant 0.000000e+00 : f32
    %7 = vector.broadcast %cst_5 : f32 to vector<64x128xf32>
    %8 = arith.maximumf %6, %7 : vector<64x128xf32>
    %9 = arith.truncf %8 : vector<64x128xf32> to vector<64x128xbf16>
    %c0_6 = arith.constant 0 : index
    %c0_7 = arith.constant 0 : index
    %10 = vector.load %arg4[%c0_6, %c0_7] : memref<128x128xbf16, #tpu.memory_space<vmem>>, vector<128x128xbf16>
    %cst_8 = arith.constant dense<0.000000e+00> : vector<64x128xf32>
    %11 = tpu.matmul %9, %10, %cst_8 {dimension_numbers = #tpu.dot_dimension_numbers<[1], [0], [0], [1], [0, 0, 1, 1], [], []>} : vector<64x128xbf16>, vector<128x128xbf16>, vector<64x128xf32> -> vector<64x128xf32>
    %c0_9 = arith.constant 0 : index
    %c0_10 = arith.constant 0 : index
    %12 = vector.load %arg5[%c0_9, %c0_10] : memref<1x128xf32, #tpu.memory_space<vmem>>, vector<1x128xf32>
    %13 = vector.broadcast %12 : vector<1x128xf32> to vector<64x128xf32>
    %14 = arith.addf %11, %13 : vector<64x128xf32>
    %cst_11 = arith.constant 0.000000e+00 : f32
    %15 = vector.broadcast %cst_11 : f32 to vector<64x128xf32>
    %16 = arith.maximumf %14, %15 : vector<64x128xf32>
    %17 = arith.truncf %16 : vector<64x128xf32> to vector<64x128xbf16>
    %c0_12 = arith.constant 0 : index
    %c0_13 = arith.constant 0 : index
    %18 = vector.load %arg6[%c0_12, %c0_13] : memref<128x128xbf16, #tpu.memory_space<vmem>>, vector<128x128xbf16>
    %cst_14 = arith.constant dense<0.000000e+00> : vector<64x128xf32>
    %19 = tpu.matmul %17, %18, %cst_14 {dimension_numbers = #tpu.dot_dimension_numbers<[1], [0], [0], [1], [0, 0, 1, 1], [], []>} : vector<64x128xbf16>, vector<128x128xbf16>, vector<64x128xf32> -> vector<64x128xf32>
    %c0_15 = arith.constant 0 : index
    %c0_16 = arith.constant 0 : index
    %20 = vector.load %arg7[%c0_15, %c0_16] : memref<1x128xf32, #tpu.memory_space<vmem>>, vector<1x128xf32>
    %21 = vector.broadcast %20 : vector<1x128xf32> to vector<64x128xf32>
    %22 = arith.addf %19, %21 : vector<64x128xf32>
    %cst_17 = arith.constant 3.000000e+00 : f32
    %23 = vector.broadcast %cst_17 : f32 to vector<64x128xf32>
    %24 = arith.addf %22, %23 : vector<64x128xf32>
    %cst_18 = arith.constant 0.000000e+00 : f32
    %cst_19 = arith.constant 6.000000e+00 : f32
    %25 = vector.broadcast %cst_18 : f32 to vector<64x128xf32>
    %26 = arith.maximumf %25, %24 : vector<64x128xf32>
    %27 = vector.broadcast %cst_19 : f32 to vector<64x128xf32>
    %28 = arith.minimumf %27, %26 : vector<64x128xf32>
    %29 = arith.mulf %22, %28 : vector<64x128xf32>
    %cst_20 = arith.constant 0.166666672 : f32
    %30 = vector.broadcast %cst_20 : f32 to vector<64x128xf32>
    %31 = arith.mulf %29, %30 : vector<64x128xf32>
    %32 = arith.truncf %31 : vector<64x128xf32> to vector<64x128xbf16>
    %c0_21 = arith.constant 0 : index
    %c0_22 = arith.constant 0 : index
    %33 = vector.load %arg8[%c0_21, %c0_22] : memref<128x128xbf16, #tpu.memory_space<vmem>>, vector<128x128xbf16>
    %cst_23 = arith.constant dense<0.000000e+00> : vector<64x128xf32>
    %34 = tpu.matmul %32, %33, %cst_23 {dimension_numbers = #tpu.dot_dimension_numbers<[1], [0], [0], [1], [0, 0, 1, 1], [], []>} : vector<64x128xbf16>, vector<128x128xbf16>, vector<64x128xf32> -> vector<64x128xf32>
    %c0_24 = arith.constant 0 : index
    %c0_25 = arith.constant 0 : index
    %35 = vector.load %arg9[%c0_24, %c0_25] : memref<1x128xf32, #tpu.memory_space<vmem>>, vector<1x128xf32>
    %36 = vector.broadcast %35 : vector<1x128xf32> to vector<64x128xf32>
    %37 = arith.addf %34, %36 : vector<64x128xf32>
    %38 = math.tanh %37 : vector<64x128xf32>
    %c0_26 = arith.constant 0 : index
    %c0_27 = arith.constant 0 : index
    %39 = vector.load %arg10[%c0_26, %c0_27] : memref<64x128xf32, #tpu.memory_space<vmem>>, vector<64x128xf32>
    tpu.vector_store %arg10[%c0_26, %c0_27], %38 {strides = array<i32>} : memref<64x128xf32, #tpu.memory_space<vmem>>, vector<64x128xf32>,
    return
  }
  func.func @transform_0(%arg0: i32) -> (i32, i32) {
    %c0_i32 = arith.constant 0 : i32
    %c0_i32_0 = arith.constant 0 : i32
    return %arg0, %c0_i32 : i32, i32
  }
  func.func @transform_1(%arg0: i32) -> (i32, i32) {
    %c0_i32 = arith.constant 0 : i32
    %c0_i32_0 = arith.constant 0 : i32
    %c0_i32_1 = arith.constant 0 : i32
    return %c0_i32, %c0_i32_0 : i32, i32
  }
  func.func @transform_2(%arg0: i32) -> (i32, i32) {
    %c0_i32 = arith.constant 0 : i32
    %c0_i32_0 = arith.constant 0 : i32
    %c0_i32_1 = arith.constant 0 : i32
    return %c0_i32, %c0_i32_0 : i32, i32
  }
  func.func @transform_3(%arg0: i32) -> (i32, i32) {
    %c0_i32 = arith.constant 0 : i32
    %c0_i32_0 = arith.constant 0 : i32
    %c0_i32_1 = arith.constant 0 : i32
    return %c0_i32, %c0_i32_0 : i32, i32
  }
  func.func @transform_4(%arg0: i32) -> (i32, i32) {
    %c0_i32 = arith.constant 0 : i32
    %c0_i32_0 = arith.constant 0 : i32
    %c0_i32_1 = arith.constant 0 : i32
    return %c0_i32, %c0_i32_0 : i32, i32
  }
  func.func @transform_5(%arg0: i32) -> (i32, i32) {
    %c0_i32 = arith.constant 0 : i32
    %c0_i32_0 = arith.constant 0 : i32
    %c0_i32_1 = arith.constant 0 : i32
    return %c0_i32, %c0_i32_0 : i32, i32
  }
  func.func @transform_6(%arg0: i32) -> (i32, i32) {
    %c0_i32 = arith.constant 0 : i32
    %c0_i32_0 = arith.constant 0 : i32
    %c0_i32_1 = arith.constant 0 : i32
    return %c0_i32, %c0_i32_0 : i32, i32
  }
  func.func @transform_7(%arg0: i32) -> (i32, i32) {
    %c0_i32 = arith.constant 0 : i32
    %c0_i32_0 = arith.constant 0 : i32
    %c0_i32_1 = arith.constant 0 : i32
    return %c0_i32, %c0_i32_0 : i32, i32
  }
  func.func @transform_8(%arg0: i32) -> (i32, i32) {
    %c0_i32 = arith.constant 0 : i32
    %c0_i32_0 = arith.constant 0 : i32
    %c0_i32_1 = arith.constant 0 : i32
    return %c0_i32, %c0_i32_0 : i32, i32
  }
  func.func @transform_9(%arg0: i32) -> (i32, i32) {
    %c0_i32 = arith.constant 0 : i32
    %c0_i32_0 = arith.constant 0 : i32
    return %arg0, %c0_i32 : i32, i32
  }
}

</mosaic_0001>

<bundles_post_ra>
// kernel: tpu_custom_call.1
= control target key start
LH: loop header
LB: loop body
LE: loop exit
PB: predicated region body
PF: predicated region fallthrough
CT: control target
= control target key end

     0   :  { %14 = vsyncpa [#allocation3], 0  ;;  %s1363_s0 = inlined_call_operand.vmem [shape: f32[256,16], index: 0, kind: input, shape index: {}]   ;;  %s1364_s1 = inlined_call_operand.vmem [shape: bf16[16,128], index: 1, kind: input, shape index: {}]   ;;  %s1365_s2 = inlined_call_operand.vmem [shape: f32[1,128], index: 2, kind: input, shape index: {}]   ;;  %s1366_s3 = inlined_call_operand.vmem [shape: bf16[128,128], index: 3, kind: input, shape index: {}]   ;;  %s1367_s4 = inlined_call_operand.vmem [shape: f32[1,128], index: 4, kind: input, shape index: {}]   ;;  %s1368_s5 = inlined_call_operand.vmem [shape: bf16[128,128], index: 5, kind: input, shape index: {}]   ;;  %s1369_s6 = inlined_call_operand.vmem [shape: f32[1,128], index: 6, kind: input, shape index: {}]   ;;  %s1370_s7 = inlined_call_operand.vmem [shape: bf16[128,128], index: 7, kind: input, shape index: {}]   ;;  %s1371_s8 = inlined_call_operand.vmem [shape: f32[1,128], index: 8, kind: input, shape index: {}]   ;;  %s1372_s9 = inlined_call_operand.hbm [shape: f32[256,128], index: 9, kind: output, shape index: {}]  }
   0x1   :  { %16 = vsyncpa [#allocation3 + $0x1], 0  ;;  %s1173_s30 = smov 0   ;;  %s1175_s10 = smov 0  }
   0x2   :  { %s1177_s11 = smov 0   ;;  %s1179_s12 = smov 0  }
   0x3 LB: > { %s1194_s13 = sadd.s32 4294967295, %s1119_s12   ;;  %s854_s14 = sadd.s32 4294967294, %s1119_s12   ;;  %s1119_s12 = sphi %s1179_s12, %s1378_s12   ;;  %s1115_s11 = sphi %s1177_s11, %s1377_s11   ;;  %s1111_s10 = sphi %s1175_s10, %s1376_s10   ;;  %s1107_s30 = sphi %s1173_s30, %s1375_s30  }
   0x4   : > { %s1198_s15 = sadd.s32 1, %s1119_s12   ;;  %s223_s16 = sadd.s32 1, %s1115_s11 }
   0x5   : > { %s220_s17 = ssub.s32 %s1119_s12, %s1198_s15  ;;  %p233_p0 = scmp.ne.s32.totalorder %s1115_s11, %s1111_s10 }
   0x6   : > { %p221_p1 = scmp.eq.s32.totalorder %s220_s17, 0  ;;  %p234_p2 = scmp.eq.s32.totalorder %s1194_s13, 3 }
   0x7   : > { %p239_p3 = scmp.ne.s32.totalorder %s1111_s10, %s1107_s30  ;;  %p240_p4 = scmp.eq.s32.totalorder %s854_s14, 3 }
   0x8   : > { %s1209_s18 = scalar_select %p221_p1, %s1115_s11, %s223_s16  }
   0x9   : > { %p1211_p5 = por %p234_p2, %p233_p0  ;;  %p1215_p6 = por %p240_p4, %p239_p3 }
   0xa   : > { %p857_p7 = scmp.ge.s32.totalorder %s1119_s12, 1  ;;  %p291_p8 = scmp.lt.s32.totalorder %s1119_s12, 5 }
   0xc   : > { %p292_p9 = pnand %p857_p7, %p291_p8 }
   0xd   : > { %s859_s23 = sshll.u32 (!%p292_p9), %s1194_s13, 3  ;;  %s995_s28 = sshll.u32 (!%p292_p9), %s1194_s13, 6 }
   0xe   : > { %295 = sbr.rel (%p292_p9) target bundleno = 660 (0x294), region = 56  ;;  %p328_p10 = scmp.lt.s32.totalorder (!%p292_p9), %s859_s23, 31 }
   0xf   : > { %s788_s16 = scalar_lea.hbm (!%p292_p9), %s1372_s9, %s995_s28  ;;  %s1077_s28 = scalar_lea.hbm (!%p292_p9), %s1372_s9, 256 }
  0x10   : > { %s791_s17 = sshll.u32 (!%p292_p9), %s788_s16, 4  ;;  %s792_s17 = int_to_ptr.hbm [resolvable:$true] %s791_s17 }
  0x11   : > { %s1071_s22 = sshra.s32 (!%p292_p9), %s792_s17, 4  ;;  %s1072_s22 = int_to_ptr.hbm [resolvable:$true] %s1071_s22 }
  0x12   : > { %s1073_s13 = scalar_lea.hbm (!%p292_p9), %s1072_s22, 64  ;;  %p1078_p0 = scmp.lt.s32.totalorder (!%p292_p9), %s1072_s22, %s1372_s9 }
  0x13   : > { %v970_v0 = vld [vmem:[%s1364_s1] sm:$0xff]  ;;  %s1380_s23 = smov (!%p328_p10, %s859_s23), 31  ;;  %vm359_vm0 = vcmask 130048   ;;  %v978_v7 = vld [vmem:[%s1366_s3 + $0x38] sm:$0xff]  ;;  %v977_v8 = vld [vmem:[%s1366_s3 + $0x30] sm:$0xff]  ;;  %p1074_p11 = scmp.ne.s32.totalorder %s1072_s22, %s1073_s13 }
  0x14   : > { %379 = vmatpush.bf16.msra.mxu0 %v970_v0  ;;  %s860_s24 = sshll.u32 %s1380_s23, 3  ;;  %481 = vmatpush.bf16.msra.mxu1 %v978_v7  ;;  %v976_v9 = vld [vmem:[%s1366_s3 + $0x28] sm:$0xff]  ;;  %v975_v12 = vld [vmem:[%s1366_s3 + $0x20] sm:$0xff]  ;;  %v974_v17 = vld [vmem:[%s1366_s3 + $0x18] sm:$0xff]  ;;  %p1079_p1 = scmp.lt.s32.totalorder %s1077_s28, %s1073_s13 }
  0x15   : > { %s331_s27 = scalar_lea.vmem %s1363_s0, %s860_s24  ;;  %v973_v18 = vld [vmem:[%s1366_s3 + $0x10] sm:$0xff]  ;;  %v972_v19 = vld [vmem:[%s1366_s3 + $0x8] sm:$0xff]  ;;  %v971_v20 = vld [vmem:[%s1366_s3] sm:$0xff]  ;;  %s324_s24 = sand.u32 1, %s1111_s10  }
  0x16   : > { %v335_v1 = vld [vmem:[%s331_s27] sm:$0xff]  ;;  %v336_v2 = vld [vmem:[%s331_s27 + $0x8] sm:$0xff]  ;;  %v337_v4 = vld [vmem:[%s331_s27 + $0x10] sm:$0xff]  ;;  %s858_s25 = sshll.u32 %s324_s24, 6  ;;  %s777_s21 = scalar_lea.sflag [#allocation3], %s324_s24 }
  0x17   : > { %v343_v3 = vpack.c.bf16 %v336_v2, %v335_v1  ;;  %v338_v5 = vld [vmem:[%s331_s27 + $0x18] sm:$0xff]  ;;  %v339_v10 = vld [vmem:[%s331_s27 + $0x20] sm:$0xff]  ;;  %v340_v11 = vld [vmem:[%s331_s27 + $0x28] sm:$0xff]  ;;  %s1319_s26 = scalar_lea.vmem [#allocation2], %s858_s25  ;;  %p1075_p12 = pnand %p1074_p11, %p1211_p5 }
  0x18   : > { %v344_v6 = vpack.c.bf16 %v338_v5, %v337_v4  ;;  %482 = vmatpush.bf16.msra.mxu1 %v977_v8  ;;  %v345_v13 = vpack.c.bf16 %v340_v11, %v339_v10  ;;  %v341_v14 = vld [vmem:[%s331_s27 + $0x30] sm:$0xff]  ;;  %v342_v15 = vld [vmem:[%s331_s27 + $0x38] sm:$0xff]  ;;  %v1037_v22 = vld [vmem:[%s1365_s2] ss:$0 sm:$0xff]  ;;  %s789_s27 = sshll.u32 %s1319_s26, 4  ;;  %p1080_p2 = por %p1079_p1, %p1078_p0  ;;  %s790_s27 = int_to_ptr.vmem [resolvable:$true] %s789_s27 }
  0x19   : > { %865 = vmatmul.msk.bf16.vlgmr.msra.gmra.mxu0 %vm359_vm0, %v343_v3  ;;  %v346_v16 = vpack.c.bf16 %v342_v15, %v341_v14  ;;  %v986_v36 = vld [vmem:[%s1368_s5 + $0x38] sm:$0xff]  ;;  %v985_v38 = vld [vmem:[%s1368_s5 + $0x30] sm:$0xff]  ;;  %v984_v39 = vld [vmem:[%s1368_s5 + $0x28] sm:$0xff]  ;;  %p1076_p13 = pneg %p1075_p12 }
  0x1a   : > { %590 = vmatpush.bf16.msra.mxu2 %v986_v36  ;;  %v983_v43 = vld [vmem:[%s1368_s5 + $0x20] sm:$0xff]  ;;  %v982_v54 = vld [vmem:[%s1368_s5 + $0x18] sm:$0xff]  ;;  %v981_v55 = vld [vmem:[%s1368_s5 + $0x10] sm:$0xff] }
  0x1b   : > { %v980_v56 = vld [vmem:[%s1368_s5 + $0x8] sm:$0xff]  ;;  %v979_v57 = vld [vmem:[%s1368_s5] sm:$0xff]  ;;  %v993_v11 = vld [vmem:[%s1370_s7 + $0x30] sm:$0xff]  ;;  %p1081_p3 = pnand %p1080_p2, %p1076_p13 }
  0x1c   : > { %483 = vmatpush.bf16.msra.mxu1 %v976_v9  ;;  %v1038_v59 = vld [vmem:[%s1367_s4] ss:$0 sm:$0xff]  ;;  %v994_v9 = vld [vmem:[%s1370_s7 + $0x38] sm:$0xff] }
  0x1d   : > { %731 = vmatpush.bf16.msra.mxu3 %v994_v9 }
  0x1e   : > { %591 = vmatpush.bf16.msra.mxu2 %v985_v38 }
  0x20   : > { %484 = vmatpush.bf16.msra.mxu1 %v975_v12 }
  0x21   : > { %732 = vmatpush.bf16.msra.mxu3 %v993_v11 }
  0x22   : > { %592 = vmatpush.bf16.msra.mxu2 %v984_v39 }
  0x24   : > { %485 = vmatpush.bf16.msra.mxu1 %v974_v17 }
  0x26   : > { %593 = vmatpush.bf16.msra.mxu2 %v983_v43 }
  0x28   : > { %486 = vmatpush.bf16.msra.mxu1 %v973_v18 }
  0x29   : > { %866 = vmatmul.msk.bf16.gmra.mxu0 %vm359_vm0, %v344_v6 }
  0x2a   : > { %594 = vmatpush.bf16.msra.mxu2 %v982_v54 }
  0x2c   : > { %487 = vmatpush.bf16.msra.mxu1 %v972_v19 }
  0x2e   : > { %595 = vmatpush.bf16.msra.mxu2 %v981_v55 }
  0x30   : > { %488 = vmatpush.bf16.msra.mxu1 %v971_v20 }
  0x32   : > { %596 = vmatpush.bf16.msra.mxu2 %v980_v56 }
  0x36   : > { %597 = vmatpush.bf16.msra.mxu2 %v979_v57 }
  0x39   : > { %867 = vmatmul.msk.bf16.gmra.mxu0 %vm359_vm0, %v345_v13 }
  0x49   : > { %868 = vmatmul.msk.bf16.gmra.mxu0 %vm359_vm0, %v346_v16 }
  0x96   : > { %v381_v21 = vpop.f32.mrf.mxu0 }
  0x97   : > { %v382_v23 = vadd.f32 %v1037_v22, %v381_v21 }
  0x99   : > { %v401_v26 = vmax.f32 %v382_v23, 0.0 }
  0x9e   : > { %v383_v24 = vpop.f32.mrf.mxu0 }
  0x9f   : > { %v384_v25 = vadd.f32 %v1037_v22, %v383_v24 }
  0xa1   : > { %v402_v27 = vmax.f32 %v384_v25, 0.0  ;;  %v992_v25 = vld [vmem:[%s1370_s7 + $0x28] sm:$0xff] }
  0xa2   : > { %733 = vmatpush.bf16.msra.mxu3 %v992_v25 }
  0xa3   : > { %v409_v28 = vpack.c.bf16 %v402_v27, %v401_v26  ;;  %v991_v26 = vld [vmem:[%s1370_s7 + $0x20] sm:$0xff]  ;;  %v990_v27 = vld [vmem:[%s1370_s7 + $0x18] sm:$0xff] }
  0xa5   : > { %489 = vmatmul.bf16.vlgmr.msra.gmra.mxu1 %v409_v28  ;;  %v989_v28 = vld [vmem:[%s1370_s7 + $0x10] sm:$0xff] }
  0xa6   : > { %v386_v29 = vpop.f32.mrf.mxu0  ;;  %734 = vmatpush.bf16.msra.mxu3 %v991_v26 }
  0xa7   : > { %v387_v30 = vadd.f32 %v1037_v22, %v386_v29  ;;  %v988_v29 = vld [vmem:[%s1370_s7 + $0x8] sm:$0xff] }
  0xa9   : > { %v403_v33 = vmax.f32 %v387_v30, 0.0  ;;  %v987_v30 = vld [vmem:[%s1370_s7] sm:$0xff] }
  0xaa   : > { %735 = vmatpush.bf16.msra.mxu3 %v990_v27 }
  0xae   : > { %v388_v31 = vpop.f32.mrf.mxu0  ;;  %736 = vmatpush.bf16.msra.mxu3 %v989_v28  ;;  %v1040_v28 = vld [vmem:[%s1371_s8] ss:$0 sm:$0xff] }
  0xaf   : > { %v389_v32 = vadd.f32 %v1037_v22, %v388_v31  ;;  %v1039_v31 = vld [vmem:[%s1369_s6] ss:$0 sm:$0xff] }
  0xb1   : > { %v404_v34 = vmax.f32 %v389_v32, 0.0 }
  0xb2   : > { %737 = vmatpush.bf16.msra.mxu3 %v988_v29 }
  0xb3   : > { %v410_v35 = vpack.c.bf16 %v404_v34, %v403_v33 }
  0xb5   : > { %494 = vmatmul.bf16.gmra.mxu1 %v410_v35 }
  0xb6   : > { %v391_v37 = vpop.f32.mrf.mxu0  ;;  %738 = vmatpush.bf16.msra.mxu3 %v987_v30 }
  0xb7   : > { %v392_v40 = vadd.f32 %v1037_v22, %v391_v37 }
  0xb9   : > { %v405_v44 = vmax.f32 %v392_v40, 0.0 }
  0xbe   : > { %v393_v41 = vpop.f32.mrf.mxu0 }
  0xbf   : > { %v394_v42 = vadd.f32 %v1037_v22, %v393_v41 }
  0xc1   : > { %v406_v45 = vmax.f32 %v394_v42, 0.0 }
  0xc3   : > { %v411_v46 = vpack.c.bf16 %v406_v45, %v405_v44 }
  0xc5   : > { %499 = vmatmul.bf16.gmra.mxu1 %v411_v46 }
  0xc6   : > { %v396_v47 = vpop.f32.mrf.mxu0 }
  0xc7   : > { %v397_v48 = vadd.f32 %v1037_v22, %v396_v47 }
  0xc9   : > { %v407_v51 = vmax.f32 %v397_v48, 0.0 }
  0xce   : > { %v398_v49 = vpop.f32.mrf.mxu0 }
  0xcf   : > { %v399_v50 = vadd.f32 %v1037_v22, %v398_v49 }
  0xd1   : > { %v408_v52 = vmax.f32 %v399_v50, 0.0 }
  0xd3   : > { %v412_v53 = vpack.c.bf16 %v408_v52, %v407_v51 }
  0xd5   : > { %504 = vmatmul.bf16.gmra.mxu1 %v412_v53 }
 0x122   : > { %v490_v58 = vpop.f32.mrf.mxu1 }
 0x123   : > { %v491_v60 = vadd.f32 %v1038_v59, %v490_v58 }
 0x125   : > { %v510_v63 = vmax.f32 %v491_v60, 0.0 }
 0x12a   : > { %v492_v61 = vpop.f32.mrf.mxu1 }
 0x12b   : > { %v493_v62 = vadd.f32 %v1038_v59, %v492_v61 }
 0x12d   : > { %v511_v0 = vmax.f32 %v493_v62, 0.0 }
 0x12f   : > { %v518_v1 = vpack.c.bf16 %v511_v0, %v510_v63 }
 0x131   : > { %598 = vmatmul.bf16.vlgmr.msra.gmra.mxu2 %v518_v1 }
 0x132   : > { %v495_v2 = vpop.f32.mrf.mxu1 }
 0x133   : > { %v496_v3 = vadd.f32 %v1038_v59, %v495_v2 }
 0x135   : > { %v512_v6 = vmax.f32 %v496_v3, 0.0 }
 0x13a   : > { %v497_v4 = vpop.f32.mrf.mxu1 }
 0x13b   : > { %v498_v5 = vadd.f32 %v1038_v59, %v497_v4 }
 0x13d   : > { %v513_v7 = vmax.f32 %v498_v5, 0.0 }
 0x13f   : > { %v519_v8 = vpack.c.bf16 %v513_v7, %v512_v6 }
 0x141   : > { %603 = vmatmul.bf16.gmra.mxu2 %v519_v8 }
 0x142   : > { %v500_v10 = vpop.f32.mrf.mxu1 }
 0x143   : > { %v501_v12 = vadd.f32 %v1038_v59, %v500_v10 }
 0x145   : > { %v514_v15 = vmax.f32 %v501_v12, 0.0 }
 0x14a   : > { %v502_v13 = vpop.f32.mrf.mxu1 }
 0x14b   : > { %v503_v14 = vadd.f32 %v1038_v59, %v502_v13 }
 0x14d   : > { %v515_v16 = vmax.f32 %v503_v14, 0.0 }
 0x14f   : > { %v520_v17 = vpack.c.bf16 %v515_v16, %v514_v15 }
 0x151   : > { %608 = vmatmul.bf16.gmra.mxu2 %v520_v17 }
 0x152   : > { %v505_v18 = vpop.f32.mrf.mxu1 }
 0x153   : > { %v506_v19 = vadd.f32 %v1038_v59, %v505_v18 }
 0x155   : > { %v516_v22 = vmax.f32 %v506_v19, 0.0 }
 0x15a   : > { %v507_v20 = vpop.f32.mrf.mxu1 }
 0x15b   : > { %v508_v21 = vadd.f32 %v1038_v59, %v507_v20 }
 0x15d   : > { %v517_v23 = vmax.f32 %v508_v21, 0.0 }
 0x15f   : > { %v521_v24 = vpack.c.bf16 %v517_v23, %v516_v22 }
 0x161   : > { %613 = vmatmul.bf16.gmra.mxu2 %v521_v24 }
 0x1b4   : > { %v599_v32 = vpop.f32.mrf.mxu2 }
 0x1b5   : > { %v600_v33 = vadd.f32 %v1039_v31, %v599_v32 }
 0x1b7   : > { %v619_v34 = vadd.f32 3.0, %v600_v33 }
 0x1b9   : > { %v627_v35 = vmax.f32 %v619_v34, 0.0 }
 0x1bb   : > { %v635_v38 = vmin.f32 %v627_v35, 6.0 }
 0x1bc   : > { %v601_v36 = vpop.f32.mrf.mxu2 }
 0x1bd   : > { %v602_v37 = vadd.f32 %v1039_v31, %v601_v36  ;;  %v643_v41 = vmul.f32 %v635_v38, %v600_v33 }
 0x1bf   : > { %v620_v39 = vadd.f32 3.0, %v602_v37  ;;  %v651_v46 = vmul.f32 0.16666667, %v643_v41 }
 0x1c1   : > { %v628_v40 = vmax.f32 %v620_v39, 0.0 }
 0x1c3   : > { %v636_v42 = vmin.f32 %v628_v40, 6.0 }
 0x1c4   : > { %v604_v43 = vpop.f32.mrf.mxu2 }
 0x1c5   : > { %v644_v44 = vmul.f32 %v636_v42, %v602_v37  ;;  %v605_v45 = vadd.f32 %v1039_v31, %v604_v43 }
 0x1c7   : > { %v652_v47 = vmul.f32 0.16666667, %v644_v44  ;;  %v621_v48 = vadd.f32 3.0, %v605_v45 }
 0x1c9   : > { %v659_v49 = vpack.c.bf16 %v652_v47, %v651_v46  ;;  %v629_v50 = vmax.f32 %v621_v48, 0.0 }
 0x1cb   : > { %739 = vmatmul.bf16.vlgmr.msra.gmra.mxu3 %v659_v49  ;;  %v637_v53 = vmin.f32 %v629_v50, 6.0 }
 0x1cc   : > { %v606_v51 = vpop.f32.mrf.mxu2 }
 0x1cd   : > { %v607_v52 = vadd.f32 %v1039_v31, %v606_v51  ;;  %v645_v56 = vmul.f32 %v637_v53, %v605_v45 }
 0x1cf   : > { %v622_v54 = vadd.f32 3.0, %v607_v52  ;;  %v653_v61 = vmul.f32 0.16666667, %v645_v56 }
 0x1d1   : > { %v630_v55 = vmax.f32 %v622_v54, 0.0 }
 0x1d3   : > { %v638_v57 = vmin.f32 %v630_v55, 6.0 }
 0x1d4   : > { %v609_v58 = vpop.f32.mrf.mxu2 }
 0x1d5   : > { %v646_v59 = vmul.f32 %v638_v57, %v607_v52  ;;  %v610_v60 = vadd.f32 %v1039_v31, %v609_v58 }
 0x1d7   : > { %v654_v62 = vmul.f32 0.16666667, %v646_v59  ;;  %v623_v63 = vadd.f32 3.0, %v610_v60 }
 0x1d9   : > { %v660_v0 = vpack.c.bf16 %v654_v62, %v653_v61  ;;  %v631_v1 = vmax.f32 %v623_v63, 0.0 }
 0x1db   : > { %744 = vmatmul.bf16.gmra.mxu3 %v660_v0  ;;  %v639_v4 = vmin.f32 %v631_v1, 6.0 }
 0x1dc   : > { %v611_v2 = vpop.f32.mrf.mxu2 }
 0x1dd   : > { %v612_v3 = vadd.f32 %v1039_v31, %v611_v2  ;;  %v647_v7 = vmul.f32 %v639_v4, %v610_v60 }
 0x1df   : > { %v624_v5 = vadd.f32 3.0, %v612_v3  ;;  %v655_v12 = vmul.f32 0.16666667, %v647_v7 }
 0x1e1   : > { %v632_v6 = vmax.f32 %v624_v5, 0.0 }
 0x1e3   : > { %v640_v8 = vmin.f32 %v632_v6, 6.0 }
 0x1e4   : > { %v614_v9 = vpop.f32.mrf.mxu2 }
 0x1e5   : > { %v648_v10 = vmul.f32 %v640_v8, %v612_v3  ;;  %v615_v11 = vadd.f32 %v1039_v31, %v614_v9 }
 0x1e7   : > { %v656_v13 = vmul.f32 0.16666667, %v648_v10  ;;  %v625_v14 = vadd.f32 3.0, %v615_v11 }
 0x1e9   : > { %v661_v15 = vpack.c.bf16 %v656_v13, %v655_v12  ;;  %v633_v16 = vmax.f32 %v625_v14, 0.0 }
 0x1eb   : > { %749 = vmatmul.bf16.gmra.mxu3 %v661_v15  ;;  %v641_v19 = vmin.f32 %v633_v16, 6.0 }
 0x1ec   : > { %v616_v17 = vpop.f32.mrf.mxu2 }
 0x1ed   : > { %v617_v18 = vadd.f32 %v1039_v31, %v616_v17  ;;  %v649_v22 = vmul.f32 %v641_v19, %v615_v11 }
 0x1ef   : > { %v626_v20 = vadd.f32 3.0, %v617_v18  ;;  %v657_v25 = vmul.f32 0.16666667, %v649_v22 }
 0x1f1   : > { %v634_v21 = vmax.f32 %v626_v20, 0.0 }
 0x1f3   : > { %v642_v23 = vmin.f32 %v634_v21, 6.0 }
 0x1f5   : > { %v650_v24 = vmul.f32 %v642_v23, %v617_v18 }
 0x1f7   : > { %v658_v26 = vmul.f32 0.16666667, %v650_v24 }
 0x1f9   : > { %v662_v27 = vpack.c.bf16 %v658_v26, %v657_v25 }
 0x1fb   : > { %754 = vmatmul.bf16.gmra.mxu3 %v662_v27 }
 0x24e   : > { %v740_v29 = vpop.f32.mrf.mxu3 }
 0x24f   : > { %v741_v30 = vadd.f32 %v1040_v28, %v740_v29 }
 0x251   : > { %1041 = vtanh.f32 %v741_v30 }
 0x256   : > { %v742_v31 = vpop.f32.mrf.mxu3 }
 0x257   : > { %v1042_v32 = vpop.eup %1041  ;;  %v743_v33 = vadd.f32 %v1040_v28, %v742_v31 }
 0x258   : > { %768 = vst [vmem:[%s1319_s26] sm:$0xff] %v1042_v32 }
 0x259   : > { %1043 = vtanh.f32 %v743_v33 }
 0x25e   : > { %v745_v34 = vpop.f32.mrf.mxu3 }
 0x25f   : > { %v1044_v35 = vpop.eup %1043  ;;  %v746_v36 = vadd.f32 %v1040_v28, %v745_v34 }
 0x260   : > { %769 = vst [vmem:[%s1319_s26 + $0x8] sm:$0xff] %v1044_v35 }
 0x261   : > { %1045 = vtanh.f32 %v746_v36 }
 0x266   : > { %v747_v37 = vpop.f32.mrf.mxu3 }
 0x267   : > { %v1046_v38 = vpop.eup %1045  ;;  %v748_v39 = vadd.f32 %v1040_v28, %v747_v37 }
 0x268   : > { %770 = vst [vmem:[%s1319_s26 + $0x10] sm:$0xff] %v1046_v38 }
 0x269   : > { %1047 = vtanh.f32 %v748_v39 }
 0x26e   : > { %v750_v40 = vpop.f32.mrf.mxu3 }
 0x26f   : > { %v1048_v41 = vpop.eup %1047  ;;  %v751_v42 = vadd.f32 %v1040_v28, %v750_v40 }
 0x270   : > { %771 = vst [vmem:[%s1319_s26 + $0x18] sm:$0xff] %v1048_v41 }
 0x271   : > { %1049 = vtanh.f32 %v751_v42 }
 0x276   : > { %v752_v43 = vpop.f32.mrf.mxu3 }
 0x277   : > { %v1050_v44 = vpop.eup %1049  ;;  %v753_v45 = vadd.f32 %v1040_v28, %v752_v43 }
 0x278   : > { %772 = vst [vmem:[%s1319_s26 + $0x20] sm:$0xff] %v1050_v44 }
 0x279   : > { %1051 = vtanh.f32 %v753_v45 }
 0x27e   : > { %v755_v46 = vpop.f32.mrf.mxu3 }
 0x27f   : > { %v1052_v47 = vpop.eup %1051  ;;  %v756_v48 = vadd.f32 %v1040_v28, %v755_v46 }
 0x280   : > { %773 = vst [vmem:[%s1319_s26 + $0x28] sm:$0xff] %v1052_v47 }
 0x281   : > { %1053 = vtanh.f32 %v756_v48 }
 0x286   : > { %v757_v49 = vpop.f32.mrf.mxu3 }
 0x287   : > { %v1054_v50 = vpop.eup %1053  ;;  %v758_v51 = vadd.f32 %v1040_v28, %v757_v49 }
 0x288   : > { %774 = vst [vmem:[%s1319_s26 + $0x30] sm:$0xff] %v1054_v50 }
 0x289   : > { %1055 = vtanh.f32 %v758_v51 }
 0x28f   : > { %v1056_v52 = vpop.eup %1055 }
 0x290   : > { %775 = vst [vmem:[%s1319_s26 + $0x38] sm:$0xff] %v1056_v52 }
 0x291   : > { %1084 = shalt.err (!%p1081_p3)
}
 0x292   : > { %s1121_s24 = smov 128   ;;  %s1122_s26 = smov 8  }
 0x293   : > { %996 = dma.vmem_to_hbm [thread:$0]  (%p1211_p5), %s790_s27, 1024, %s792_s17, %s777_s21, %s1121_s24, %s1121_s24, %s1122_s26  }
 0x294 PF: > { %p1002_p4 = scmp.ge.s32.totalorder %s1119_s12, 2  ;;  %s806_s16 = sand.u32 1, %s1107_s30  }
 0x295   : > { %s807_s23 = scalar_lea.sflag [#allocation3], %s806_s16 }
 0x296   : > { %p999_p7 = pnand %p1002_p4, %p1215_p6 }
 0x298   : > { %p1000_p8 = pneg %p999_p7 }
 0x29a   : > { %1102 = dma.done.wait (%p1000_p8), %s807_s23, 1024  }
 0x29b   : > { %1104 = vsyncadd (%p1000_p8), %s807_s23, 4294966272  ;;  %p19_p9 = scmp.ge.s32.totalorder %s1198_s15, 6   ;;  %s1375_s30 = smov %s1111_s10 }
 0x29c   : > { %s1376_s10 = smov %s1115_s11  ;;  %s1377_s11 = smov %s1209_s18 }
 0x29d   : > { %s1378_s12 = smov %s1198_s15  ;;  %21 = sbr.rel (!%p19_p9) target bundleno = 3 (0x3), region = 91 }
 0x2a2   :  { %813 = vsyncpa [#allocation3], 1 }
 0x2a3   :  { %815 = vsyncpa [#allocation3 + $0x1], 1 }

</bundles_post_ra>
